<compile_context>
chip_gen: v6e
topology: v6e:2x2x1
jax: 0.10.0
libtpu: 0.0.40
codegen_flags: <defaults>
</compile_context>

<pallas_src>
import functools
import math

import jax
import jax.numpy as jnp
from jax.experimental import pallas as pl
from jax.experimental.pallas import tpu as pltpu

_MIB = 1 << 20


# ----------------------------- helpers ------------------------------------- #

def _layernorm(x, gamma, beta, eps=1e-5):
    mean = jnp.mean(x, axis=-1, keepdims=True)
    var = jnp.mean((x - mean) ** 2, axis=-1, keepdims=True)
    return (x - mean) * jax.lax.rsqrt(var + eps) * gamma + beta


def _gelu_exact(x):
    return 0.5 * x * (1.0 + jax.lax.erf(x * (1.0 / math.sqrt(2.0))))


def _pick_tile(n, preferred):
    for t in preferred:
        if t <= n and n % t == 0:
            return t
    return n


def _const_spec(shape):
    """BlockSpec for a grid-invariant (weight) input: constant index map and,
    where supported, single-buffered (weights never change block, so the
    default double buffer only wastes VMEM)."""
    ndim = len(shape)
    idx = lambda *args: (0,) * ndim
    try:
        return pl.BlockSpec(shape, idx, pipeline_mode=pl.Buffered(1))
    except (TypeError, AttributeError):   # older JAX without pipeline_mode
        return pl.BlockSpec(shape, idx)


def _vmem_limit(working_set_bytes):
    est = int(working_set_bytes * 1.5)            # margin for compiler temps
    lim = max(32 * _MIB, est)
    if lim <= 64 * _MIB:                          # stay under v7x physical VMEM
        return lim
    return min(lim, 100 * _MIB)                   # v5e/v6e have 128 MiB physical


# ----------------------------- kernels ------------------------------------- #

def _ln_qkv_kernel(x_ref, g_ref, b_ref, wqkv_ref, bqkv_ref, o_ref):
    # x: (1, TR, D) fp32 -> qkv: (1, TR, 3D) bf16.  One wide MXU matmul.
    x = x_ref[0].astype(jnp.float32)
    h = _layernorm(x, g_ref[...], b_ref[...]).astype(jnp.bfloat16)
    qkv = jnp.dot(h, wqkv_ref[...], preferred_element_type=jnp.float32)
    o_ref[0] = (qkv + bqkv_ref[...]).astype(o_ref.dtype)


def _flash_attention_kernel(q_ref, k_ref, v_ref, o_ref, m_sc, l_sc, acc_sc,
                            *, causal):
    # q: (1, TQ, dh), k/v: (1, TK, dh) bf16.  kv-tile axis is the reduction axis.
    tq = q_ref.shape[1]
    tk = k_ref.shape[1]
    ki = pl.program_id(2)

    @pl.when(ki == 0)
    def _init():
        m_sc[...] = jnp.full_like(m_sc, -jnp.inf)
        l_sc[...] = jnp.zeros_like(l_sc)
        acc_sc[...] = jnp.zeros_like(acc_sc)

    q_start = pl.program_id(1) * tq
    k_start = ki * tk

    def _update():
        # scores: contract dh directly (no explicit transpose); scale already
        # folded into Wq in the wrapper.
        s = jax.lax.dot_general(
            q_ref[0], k_ref[0], (((1,), (1,)), ((), ())),
            preferred_element_type=jnp.float32)                    # (TQ, TK)
        if causal:
            row = q_start + jax.lax.broadcasted_iota(jnp.int32, (tq, tk), 0)
            col = k_start + jax.lax.broadcasted_iota(jnp.int32, (tq, tk), 1)
            s = jnp.where(col <= row, s, -1e30)
        m_prev = m_sc[...]
        m_new = jnp.maximum(m_prev, jnp.max(s, axis=-1, keepdims=True))
        alpha = jnp.exp(m_prev - m_new)
        p = jnp.exp(s - m_new)
        l_sc[...] = alpha * l_sc[...] + jnp.sum(p, axis=-1, keepdims=True)
        acc_sc[...] = alpha * acc_sc[...] + jnp.dot(
            p.astype(jnp.bfloat16), v_ref[0], preferred_element_type=jnp.float32)
        m_sc[...] = m_new

    if causal:
        # Skip kv tiles that lie entirely above the diagonal (fully masked).
        pl.when(k_start <= q_start + tq - 1)(_update)
    else:
        _update()

    @pl.when(ki == pl.num_programs(2) - 1)
    def _finalize():
        # Exact divide, once per query tile (keeps softmax rows exact; the
        # approx-reciprocal saving here is negligible anyway).
        o_ref[0] = (acc_sc[...] / l_sc[...]).astype(o_ref.dtype)


def _attnout_mlp_kernel(x_ref, attn_ref, wo_ref, bo_ref, g2_ref, be2_ref,
                        w1_ref, b1_ref, w2_ref, b2_ref, o_ref,
                        x1_sc, h2_sc, acc_sc):
    # Grid: (batch, row-tile, hidden-tile).  Hidden tile is the reduction axis.
    hi = pl.program_id(2)

    @pl.when(hi == 0)
    def _head():
        # out-projection (one wide (TR,D)@(D,D) matmul) + residual + LN2,
        # computed once per (batch, row-tile) and cached in scratch.
        proj = jnp.dot(attn_ref[0], wo_ref[...],
                       preferred_element_type=jnp.float32) + bo_ref[...]
        x1 = x_ref[0].astype(jnp.float32) + proj       # residual 1 (dropout=id)
        x1_sc[...] = x1
        h2_sc[...] = _layernorm(x1, g2_ref[...], be2_ref[...]).astype(jnp.bfloat16)
        acc_sc[...] = jnp.zeros_like(acc_sc)

    m = jnp.dot(h2_sc[...], w1_ref[...],
                preferred_element_type=jnp.float32) + b1_ref[...]
    m = _gelu_exact(m)                                              # (TR, TH)
    acc_sc[...] += jnp.dot(m.astype(jnp.bfloat16), w2_ref[...],
                           preferred_element_type=jnp.float32)

    @pl.when(hi == pl.num_programs(2) - 1)
    def _tail():
        o_ref[0] = (x1_sc[...] + acc_sc[...] + b2_ref[...]).astype(o_ref.dtype)


# ----------------------------- wrapper ------------------------------------- #

@functools.partial(
    jax.jit,
    static_argnames=("num_heads", "causal", "row_tile", "q_tile", "kv_tile",
                     "hidden_tile"))
def transformer_block(x, params, *, num_heads, causal=False,
                      row_tile=None, q_tile=None, kv_tile=None, hidden_tile=None):
    B, S, D = x.shape
    assert D % num_heads == 0, "dim must be divisible by num_heads"
    H, dh = num_heads, D // num_heads
    hidden = params["w1"].shape[-1]
    bf16, f32 = jnp.bfloat16, jnp.float32
    scale = 1.0 / math.sqrt(dh)

    tr = row_tile or _pick_tile(S, (256, 128, 64, 32, 16, 8))
    tq = q_tile or _pick_tile(S, (128, 64, 32, 16, 8))
    tk = kv_tile or _pick_tile(S, (128, 64, 32, 16, 8))
    th = hidden_tile or _pick_tile(hidden, (512, 256, 128))
    assert S % tr == 0 and S % tq == 0 and S % tk == 0 and hidden % th == 0

    # ---- weight prep: fold softmax scale into Wq/bq, fuse QKV, cast bf16 ----
    wqkv = jnp.concatenate(
        [params["wq"].astype(f32) * scale,
         params["wk"].astype(f32),
         params["wv"].astype(f32)], axis=1).astype(bf16)            # (D, 3D)
    bqkv = jnp.concatenate(
        [params["bq"].astype(f32) * scale,
         params["bk"].astype(f32),
         params["bv"].astype(f32)], axis=1)                         # (1, 3D)
    ln1_g, ln1_b = params["ln1_g"].astype(f32), params["ln1_b"].astype(f32)
    ln2_g, ln2_b = params["ln2_g"].astype(f32), params["ln2_b"].astype(f32)
    wo, bo = params["wo"].astype(bf16), params["bo"].astype(f32)
    w1, b1 = params["w1"].astype(bf16), params["b1"].astype(f32)
    w2, b2 = params["w2"].astype(bf16), params["b2"].astype(f32)

    # ---------------- 1) LN1 + fused QKV projection ---------------- #
    qkv_ws = (2 * tr * D * 4                       # x block (double-buffered)
              + 2 * tr * 3 * D * 2                 # qkv out block
              + D * 3 * D * 2 + 3 * D * 4 + 8 * D  # weights (single-buffered)
              + tr * D * 6 + tr * 3 * D * 4)       # LN / matmul intermediates
    qkv = pl.pallas_call(
        _ln_qkv_kernel,
        out_shape=jax.ShapeDtypeStruct((B, S, 3 * D), bf16),
        grid_spec=pltpu.PrefetchScalarGridSpec(
            num_scalar_prefetch=0,
            grid=(B, S // tr),
            in_specs=[
                pl.BlockSpec((1, tr, D), lambda b, r: (b, r, 0)),
                _const_spec((1, D)), _const_spec((1, D)),
                _const_spec((D, 3 * D)), _const_spec((1, 3 * D)),
            ],
            out_specs=pl.BlockSpec((1, tr, 3 * D), lambda b, r: (b, r, 0)),
        ),
        compiler_params=pltpu.CompilerParams(
            dimension_semantics=("parallel", "parallel"),
            vmem_limit_bytes=_vmem_limit(qkv_ws)),
    )(x, ln1_g, ln1_b, wqkv, bqkv)

    # head-major layout for flash attention (cheap XLA transposes on bf16).
    def _to_heads(t):                               # (B,S,D) -> (B*H,S,dh)
        return t.reshape(B, S, H, dh).transpose(0, 2, 1, 3).reshape(B * H, S, dh)

    qh = _to_heads(qkv[:, :, :D])
    kh = _to_heads(qkv[:, :, D:2 * D])
    vh = _to_heads(qkv[:, :, 2 * D:])

    # ---------------- 2) flash attention ---------------- #
    fa_ws = (2 * (2 * tq * dh + 2 * tk * dh) * 2    # q/o + k/v blocks
             + tq * (dh + 2) * 4                    # m / l / acc scratch
             + 4 * tq * tk * 4)                     # s / p intermediates
    attn_h = pl.pallas_call(
        functools.partial(_flash_attention_kernel, causal=causal),
        out_shape=jax.ShapeDtypeStruct((B * H, S, dh), bf16),
        grid_spec=pltpu.PrefetchScalarGridSpec(
            num_scalar_prefetch=0,
            grid=(B * H, S // tq, S // tk),
            in_specs=[
                pl.BlockSpec((1, tq, dh), lambda bh, qi, ki: (bh, qi, 0)),
                pl.BlockSpec((1, tk, dh), lambda bh, qi, ki: (bh, ki, 0)),
                pl.BlockSpec((1, tk, dh), lambda bh, qi, ki: (bh, ki, 0)),
            ],
            out_specs=pl.BlockSpec((1, tq, dh), lambda bh, qi, ki: (bh, qi, 0)),
            scratch_shapes=[
                pltpu.VMEM((tq, 1), f32),           # running max m
                pltpu.VMEM((tq, 1), f32),           # running denom l
                pltpu.VMEM((tq, dh), f32),          # output accumulator
            ],
        ),
        compiler_params=pltpu.CompilerParams(
            dimension_semantics=("parallel", "parallel", "arbitrary"),
            vmem_limit_bytes=_vmem_limit(fa_ws)),
    )(qh, kh, vh)

    attn = attn_h.reshape(B, H, S, dh).transpose(0, 2, 1, 3).reshape(B, S, D)

    # ------- 3) out-proj + residual + LN2 + MLP(hidden-tiled) + residual ------- #
    mlp_ws = (2 * tr * D * 4 + 2 * tr * D * 2       # x / attn blocks
              + 2 * tr * D * x.dtype.itemsize       # out block
              + D * D * 2 + 16 * D                  # wo + bias / LN vectors
              + 2 * (D * th * 2) + 2 * (th * D * 2) + 2 * th * 4  # w1/w2/b1 tiles
              + tr * D * 10                         # x1 / h2 / acc scratch
              + 2 * tr * th * 4 + tr * D * 4)       # GELU / proj intermediates
    out = pl.pallas_call(
        _attnout_mlp_kernel,
        out_shape=jax.ShapeDtypeStruct((B, S, D), x.dtype),
        grid_spec=pltpu.PrefetchScalarGridSpec(
            num_scalar_prefetch=0,
            grid=(B, S // tr, hidden // th),
            in_specs=[
                pl.BlockSpec((1, tr, D), lambda b, r, h: (b, r, 0)),   # x (residual)
                pl.BlockSpec((1, tr, D), lambda b, r, h: (b, r, 0)),   # attention out
                _const_spec((D, D)),                                   # wo
                _const_spec((1, D)),                                   # bo
                _const_spec((1, D)),                                   # ln2 gamma
                _const_spec((1, D)),                                   # ln2 beta
                pl.BlockSpec((D, th), lambda b, r, h: (0, h)),         # w1 tile
                pl.BlockSpec((1, th), lambda b, r, h: (0, h)),         # b1 tile
                pl.BlockSpec((th, D), lambda b, r, h: (h, 0)),         # w2 tile
                _const_spec((1, D)),                                   # b2
            ],
            out_specs=pl.BlockSpec((1, tr, D), lambda b, r, h: (b, r, 0)),
            scratch_shapes=[
                pltpu.VMEM((tr, D), f32),            # x1 (post-attn residual)
                pltpu.VMEM((tr, D), bf16),           # LN2 activations
                pltpu.VMEM((tr, D), f32),            # MLP output accumulator
            ],
        ),
        compiler_params=pltpu.CompilerParams(
            dimension_semantics=("parallel", "parallel", "arbitrary"),
            vmem_limit_bytes=_vmem_limit(mlp_ws)),
    )(x, attn, wo, bo, ln2_g, ln2_b, w1, b1, w2, b2)

    return out


# ------------------------ pure-JAX reference ------------------------------- #

def transformer_block_ref(x, params, *, num_heads, causal=False):
    B, S, D = x.shape
    dh = D // num_heads
    scale = 1.0 / math.sqrt(dh)

    def ln(v, g, b):
        mean = jnp.mean(v, axis=-1, keepdims=True)
        var = jnp.mean((v - mean) ** 2, axis=-1, keepdims=True)
        return (v - mean) / jnp.sqrt(var + 1e-5) * g + b

    h = ln(x, params["ln1_g"], params["ln1_b"])
    q = h @ params["wq"] + params["bq"]
    k = h @ params["wk"] + params["bk"]
    v = h @ params["wv"] + params["bv"]
    q = q.reshape(B, S, num_heads, dh).transpose(0, 2, 1, 3)
    k = k.reshape(B, S, num_heads, dh).transpose(0, 2, 1, 3)
    v = v.reshape(B, S, num_heads, dh).transpose(0, 2, 1, 3)
    s = jnp.einsum("bhqd,bhkd->bhqk", q, k) * scale
    if causal:
        mask = jnp.tril(jnp.ones((S, S), bool))
        s = jnp.where(mask, s, -jnp.inf)
    p = jax.nn.softmax(s, axis=-1)
    a = jnp.einsum("bhqk,bhkd->bhqd", p, v).transpose(0, 2, 1, 3).reshape(B, S, D)
    a = a @ params["wo"] + params["bo"]
    x = x + a
    h2 = ln(x, params["ln2_g"], params["ln2_b"])
    m = h2 @ params["w1"] + params["b1"]
    m = 0.5 * m * (1.0 + jax.lax.erf(m / math.sqrt(2.0)))
    m = m @ params["w2"] + params["b2"]
    return x + m


# --------------------------------- main ------------------------------------ #

def make_params(key, dim):
    hidden = dim * 4
    keys = jax.random.split(key, 6)

    def w(k, shape):
        return jax.random.normal(k, shape, jnp.float32) * 0.02

    return {
        "ln1_g": jnp.ones((1, dim), jnp.float32),
        "ln1_b": jnp.zeros((1, dim), jnp.float32),
        "wq": w(keys[0], (dim, dim)), "bq": jnp.zeros((1, dim), jnp.float32),
        "wk": w(keys[1], (dim, dim)), "bk": jnp.zeros((1, dim), jnp.float32),
        "wv": w(keys[2], (dim, dim)), "bv": jnp.zeros((1, dim), jnp.float32),
        "wo": w(keys[3], (dim, dim)), "bo": jnp.zeros((1, dim), jnp.float32),
        "ln2_g": jnp.ones((1, dim), jnp.float32),
        "ln2_b": jnp.zeros((1, dim), jnp.float32),
        "w1": w(keys[4], (dim, hidden)), "b1": jnp.zeros((1, hidden), jnp.float32),
        "w2": w(keys[5], (hidden, dim)), "b2": jnp.zeros((1, dim), jnp.float32),
    }


if __name__ == "__main__":
    key = jax.random.PRNGKey(0)

    # Test 1: tiny shape matching the module example (single-tile grids).
    B, S, D, H = 2, 8, 32, 4
    kx, kp, key = jax.random.split(key, 3)
    x = jax.random.normal(kx, (B, S, D), jnp.float32)
    params = make_params(kp, D)
    out = jax.block_until_ready(transformer_block(x, params, num_heads=H, causal=False))
    ref = transformer_block_ref(x, params, num_heads=H, causal=False)
    assert out.shape == (B, S, D)
    # bf16 matmul operands -> loosened tolerance.
    assert jnp.allclose(out, ref, atol=2e-2, rtol=2e-2), "tiny-shape mismatch"

    # Test 2: exercises multi-tile flash attention (nq=nk=2), causal masking
    # with tile skipping, (8,128)-tiled blocks and the MLP hidden-tile axis.
    B2, S2, D2, H2 = 1, 256, 128, 2
    kx2, kp2 = jax.random.split(key)
    x2 = jax.random.normal(kx2, (B2, S2, D2), jnp.float32)
    params2 = make_params(kp2, D2)
    out2 = jax.block_until_ready(
        transformer_block(x2, params2, num_heads=H2, causal=True, hidden_tile=256))
    ref2 = transformer_block_ref(x2, params2, num_heads=H2, causal=True)
    assert out2.shape == (B2, S2, D2)
    assert jnp.allclose(out2, ref2, atol=2e-2, rtol=2e-2), "causal mismatch"

    print("KERNEL_OK")
</pallas_src>

<mosaic_0001>
module attributes {stable_mosaic.version = 11 : i64} {
  func.func @_ln_qkv_kernel(%arg0: i32, %arg1: i32, %arg2: memref<1x8x32xf32, #tpu.memory_space<vmem>>, %arg3: memref<1x32xf32, #tpu.memory_space<vmem>>, %arg4: memref<1x32xf32, #tpu.memory_space<vmem>>, %arg5: memref<32x96xbf16, #tpu.memory_space<vmem>>, %arg6: memref<1x96xf32, #tpu.memory_space<vmem>>, %arg7: memref<1x8x96xbf16, #tpu.memory_space<vmem>>) attributes {dimension_semantics = [#tpu.dimension_semantics<parallel>, #tpu.dimension_semantics<parallel>], iteration_bounds = array<i64: 2, 1>, scalar_prefetch = 0 : i64, scratch_operands = 0 : i64, tpu.core_type = #tpu.core_type<tc>, window_params = [{transform_indices = @transform_0, window_bounds = array<i64: 1, 8, 32>}, {pipeline_mode = #tpu.pipeline_mode<synchronous>, transform_indices = @transform_1, window_bounds = array<i64: 1, 32>}, {pipeline_mode = #tpu.pipeline_mode<synchronous>, transform_indices = @transform_2, window_bounds = array<i64: 1, 32>}, {pipeline_mode = #tpu.pipeline_mode<synchronous>, transform_indices = @transform_3, window_bounds = array<i64: 32, 96>}, {pipeline_mode = #tpu.pipeline_mode<synchronous>, transform_indices = @transform_4, window_bounds = array<i64: 1, 96>}, {transform_indices = @transform_5, window_bounds = array<i64: 1, 8, 96>}]} {
    %c0 = arith.constant 0 : index
    %c0_0 = arith.constant 0 : index
    %c0_1 = arith.constant 0 : index
    %0 = vector.load %arg2[%c0, %c0_0, %c0_1] : memref<1x8x32xf32, #tpu.memory_space<vmem>>, vector<1x8x32xf32>
    %1 = vector.shape_cast %0 : vector<1x8x32xf32> to vector<8x32xf32>
    %c0_2 = arith.constant 0 : index
    %c0_3 = arith.constant 0 : index
    %2 = vector.load %arg3[%c0_2, %c0_3] : memref<1x32xf32, #tpu.memory_space<vmem>>, vector<1x32xf32>
    %c0_4 = arith.constant 0 : index
    %c0_5 = arith.constant 0 : index
    %3 = vector.load %arg4[%c0_4, %c0_5] : memref<1x32xf32, #tpu.memory_space<vmem>>, vector<1x32xf32>
    %cst = arith.constant dense<0.000000e+00> : vector<8xf32>
    %4 = vector.multi_reduction <add>, %1, %cst [1] : vector<8x32xf32> to vector<8xf32>
    %5 = vector.shape_cast %4 : vector<8xf32> to vector<8x1xf32>
    %cst_6 = arith.constant 3.200000e+01 : f32
    %6 = vector.broadcast %cst_6 : f32 to vector<8x1xf32>
    %7 = arith.divf %5, %6 : vector<8x1xf32>
    %8 = vector.broadcast %7 : vector<8x1xf32> to vector<8x32xf32>
    %9 = arith.subf %1, %8 : vector<8x32xf32>
    %10 = arith.mulf %9, %9 : vector<8x32xf32>
    %cst_7 = arith.constant dense<0.000000e+00> : vector<8xf32>
    %11 = vector.multi_reduction <add>, %10, %cst_7 [1] : vector<8x32xf32> to vector<8xf32>
    %12 = vector.shape_cast %11 : vector<8xf32> to vector<8x1xf32>
    %cst_8 = arith.constant 3.200000e+01 : f32
    %13 = vector.broadcast %cst_8 : f32 to vector<8x1xf32>
    %14 = arith.divf %12, %13 : vector<8x1xf32>
    %15 = vector.broadcast %7 : vector<8x1xf32> to vector<8x32xf32>
    %16 = arith.subf %1, %15 : vector<8x32xf32>
    %cst_9 = arith.constant 9.99999974E-6 : f32
    %17 = vector.broadcast %cst_9 : f32 to vector<8x1xf32>
    %18 = arith.addf %14, %17 : vector<8x1xf32>
    %19 = math.rsqrt %18 : vector<8x1xf32>
    %20 = vector.broadcast %19 : vector<8x1xf32> to vector<8x32xf32>
    %21 = arith.mulf %16, %20 : vector<8x32xf32>
    %22 = vector.broadcast %2 : vector<1x32xf32> to vector<8x32xf32>
    %23 = arith.mulf %21, %22 : vector<8x32xf32>
    %24 = vector.broadcast %3 : vector<1x32xf32> to vector<8x32xf32>
    %25 = arith.addf %23, %24 : vector<8x32xf32>
    %26 = arith.truncf %25 : vector<8x32xf32> to vector<8x32xbf16>
    %c0_10 = arith.constant 0 : index
    %c0_11 = arith.constant 0 : index
    %27 = vector.load %arg5[%c0_10, %c0_11] : memref<32x96xbf16, #tpu.memory_space<vmem>>, vector<32x96xbf16>
    %cst_12 = arith.constant dense<0.000000e+00> : vector<8x96xf32>
    %28 = tpu.matmul %26, %27, %cst_12 {dimension_numbers = #tpu.dot_dimension_numbers<[1], [0], [0], [1], [0, 0, 1, 1], [], []>} : vector<8x32xbf16>, vector<32x96xbf16>, vector<8x96xf32> -> vector<8x96xf32>
    %c0_13 = arith.constant 0 : index
    %c0_14 = arith.constant 0 : index
    %29 = vector.load %arg6[%c0_13, %c0_14] : memref<1x96xf32, #tpu.memory_space<vmem>>, vector<1x96xf32>
    %30 = vector.broadcast %29 : vector<1x96xf32> to vector<8x96xf32>
    %31 = arith.addf %28, %30 : vector<8x96xf32>
    %32 = arith.truncf %31 : vector<8x96xf32> to vector<8x96xbf16>
    %c0_15 = arith.constant 0 : index
    %c0_16 = arith.constant 0 : index
    %c0_17 = arith.constant 0 : index
    %33 = vector.load %arg7[%c0_15, %c0_16, %c0_17] : memref<1x8x96xbf16, #tpu.memory_space<vmem>>, vector<1x8x96xbf16>
    %34 = vector.shape_cast %33 : vector<1x8x96xbf16> to vector<8x96xbf16>
    %35 = vector.shape_cast %32 : vector<8x96xbf16> to vector<1x8x96xbf16>
    tpu.vector_store %arg7[%c0_15, %c0_16, %c0_17], %35 {strides = array<i32>} : memref<1x8x96xbf16, #tpu.memory_space<vmem>>, vector<1x8x96xbf16>,
    return
  }
  func.func @transform_0(%arg0: i32, %arg1: i32) -> (i32, i32, i32) {
    %c0_i32 = arith.constant 0 : i32
    %c0_i32_0 = arith.constant 0 : i32
    return %arg0, %arg1, %c0_i32 : i32, i32, i32
  }
  func.func @transform_1(%arg0: i32, %arg1: i32) -> (i32, i32) {
    %c0_i32 = arith.constant 0 : i32
    %c0_i32_0 = arith.constant 0 : i32
    %c0_i32_1 = arith.constant 0 : i32
    return %c0_i32, %c0_i32_0 : i32, i32
  }
  func.func @transform_2(%arg0: i32, %arg1: i32) -> (i32, i32) {
    %c0_i32 = arith.constant 0 : i32
    %c0_i32_0 = arith.constant 0 : i32
    %c0_i32_1 = arith.constant 0 : i32
    return %c0_i32, %c0_i32_0 : i32, i32
  }
  func.func @transform_3(%arg0: i32, %arg1: i32) -> (i32, i32) {
    %c0_i32 = arith.constant 0 : i32
    %c0_i32_0 = arith.constant 0 : i32
    %c0_i32_1 = arith.constant 0 : i32
    return %c0_i32, %c0_i32_0 : i32, i32
  }
  func.func @transform_4(%arg0: i32, %arg1: i32) -> (i32, i32) {
    %c0_i32 = arith.constant 0 : i32
    %c0_i32_0 = arith.constant 0 : i32
    %c0_i32_1 = arith.constant 0 : i32
    return %c0_i32, %c0_i32_0 : i32, i32
  }
  func.func @transform_5(%arg0: i32, %arg1: i32) -> (i32, i32, i32) {
    %c0_i32 = arith.constant 0 : i32
    %c0_i32_0 = arith.constant 0 : i32
    return %arg0, %arg1, %c0_i32 : i32, i32, i32
  }
}

module attributes {stable_mosaic.version = 11 : i64} {
  func.func @_flash_attention_kernel(%arg0: i32, %arg1: i32, %arg2: i32, %arg3: memref<1x8x8xbf16, #tpu.memory_space<vmem>>, %arg4: memref<1x8x8xbf16, #tpu.memory_space<vmem>>, %arg5: memref<1x8x8xbf16, #tpu.memory_space<vmem>>, %arg6: memref<1x8x8xbf16, #tpu.memory_space<vmem>>, %arg7: memref<8x1xf32, #tpu.memory_space<vmem>>, %arg8: memref<8x1xf32, #tpu.memory_space<vmem>>, %arg9: memref<8x8xf32, #tpu.memory_space<vmem>>) attributes {dimension_semantics = [#tpu.dimension_semantics<parallel>, #tpu.dimension_semantics<parallel>, #tpu.dimension_semantics<arbitrary>], iteration_bounds = array<i64: 8, 1, 1>, scalar_prefetch = 0 : i64, scratch_operands = 3 : i64, tpu.core_type = #tpu.core_type<tc>, window_params = [{transform_indices = @transform_0, window_bounds = array<i64: 1, 8, 8>}, {transform_indices = @transform_1, window_bounds = array<i64: 1, 8, 8>}, {transform_indices = @transform_2, window_bounds = array<i64: 1, 8, 8>}, {transform_indices = @transform_3, window_bounds = array<i64: 1, 8, 8>}]} {
    %c0_i32 = arith.constant 0 : i32
    %0 = arith.cmpi eq, %arg2, %c0_i32 : i32
    %1 = arith.extui %0 : i1 to i32
    %c0_i32_0 = arith.constant 0 : i32
    %2 = arith.cmpi ne, %1, %c0_i32_0 : i32
    scf.if %2 {
      %cst_26 = arith.constant 0xFF800000 : f32
      %36 = vector.broadcast %cst_26 : f32 to vector<8x1xf32>
      %c0_27 = arith.constant 0 : index
      %c0_28 = arith.constant 0 : index
      %37 = vector.load %arg7[%c0_27, %c0_28] : memref<8x1xf32, #tpu.memory_space<vmem>>, vector<8x1xf32>
      tpu.vector_store %arg7[%c0_27, %c0_28], %36 {strides = array<i32>} : memref<8x1xf32, #tpu.memory_space<vmem>>, vector<8x1xf32>,
      %cst_29 = arith.constant 0.000000e+00 : f32
      %38 = vector.broadcast %cst_29 : f32 to vector<8x1xf32>
      %c0_30 = arith.constant 0 : index
      %c0_31 = arith.constant 0 : index
      %39 = vector.load %arg8[%c0_30, %c0_31] : memref<8x1xf32, #tpu.memory_space<vmem>>, vector<8x1xf32>
      tpu.vector_store %arg8[%c0_30, %c0_31], %38 {strides = array<i32>} : memref<8x1xf32, #tpu.memory_space<vmem>>, vector<8x1xf32>,
      %cst_32 = arith.constant 0.000000e+00 : f32
      %40 = vector.broadcast %cst_32 : f32 to vector<8x8xf32>
      %c0_33 = arith.constant 0 : index
      %c0_34 = arith.constant 0 : index
      %41 = vector.load %arg9[%c0_33, %c0_34] : memref<8x8xf32, #tpu.memory_space<vmem>>, vector<8x8xf32>
      tpu.vector_store %arg9[%c0_33, %c0_34], %40 {strides = array<i32>} : memref<8x8xf32, #tpu.memory_space<vmem>>, vector<8x8xf32>,
    } else {
    }
    %c0 = arith.constant 0 : index
    %c0_1 = arith.constant 0 : index
    %c0_2 = arith.constant 0 : index
    %3 = vector.load %arg3[%c0, %c0_1, %c0_2] : memref<1x8x8xbf16, #tpu.memory_space<vmem>>, vector<1x8x8xbf16>
    %4 = vector.shape_cast %3 : vector<1x8x8xbf16> to vector<8x8xbf16>
    %c0_3 = arith.constant 0 : index
    %c0_4 = arith.constant 0 : index
    %c0_5 = arith.constant 0 : index
    %5 = vector.load %arg4[%c0_3, %c0_4, %c0_5] : memref<1x8x8xbf16, #tpu.memory_space<vmem>>, vector<1x8x8xbf16>
    %6 = vector.shape_cast %5 : vector<1x8x8xbf16> to vector<8x8xbf16>
    %cst = arith.constant dense<0.000000e+00> : vector<8x8xf32>
    %7 = tpu.matmul %4, %6, %cst {dimension_numbers = #tpu.dot_dimension_numbers<[1], [1], [0], [0], [0, 0, 1, 0], [], []>} : vector<8x8xbf16>, vector<8x8xbf16>, vector<8x8xf32> -> vector<8x8xf32>
    %c0_6 = arith.constant 0 : index
    %c0_7 = arith.constant 0 : index
    %8 = vector.load %arg7[%c0_6, %c0_7] : memref<8x1xf32, #tpu.memory_space<vmem>>, vector<8x1xf32>
    %cst_8 = arith.constant dense<0xFF800000> : vector<8xf32>
    %9 = vector.multi_reduction <maximumf>, %7, %cst_8 [1] : vector<8x8xf32> to vector<8xf32>
    %10 = vector.shape_cast %9 : vector<8xf32> to vector<8x1xf32>
    %11 = arith.maximumf %8, %10 : vector<8x1xf32>
    %12 = arith.subf %8, %11 : vector<8x1xf32>
    %13 = math.exp %12 : vector<8x1xf32>
    %14 = vector.broadcast %11 : vector<8x1xf32> to vector<8x8xf32>
    %15 = arith.subf %7, %14 : vector<8x8xf32>
    %16 = math.exp %15 : vector<8x8xf32>
    %c0_9 = arith.constant 0 : index
    %c0_10 = arith.constant 0 : index
    %17 = vector.load %arg8[%c0_9, %c0_10] : memref<8x1xf32, #tpu.memory_space<vmem>>, vector<8x1xf32>
    %18 = arith.mulf %13, %17 : vector<8x1xf32>
    %cst_11 = arith.constant dense<0.000000e+00> : vector<8xf32>
    %19 = vector.multi_reduction <add>, %16, %cst_11 [1] : vector<8x8xf32> to vector<8xf32>
    %20 = vector.shape_cast %19 : vector<8xf32> to vector<8x1xf32>
    %21 = arith.addf %18, %20 : vector<8x1xf32>
    %c0_12 = arith.constant 0 : index
    %c0_13 = arith.constant 0 : index
    %22 = vector.load %arg8[%c0_12, %c0_13] : memref<8x1xf32, #tpu.memory_space<vmem>>, vector<8x1xf32>
    tpu.vector_store %arg8[%c0_12, %c0_13], %21 {strides = array<i32>} : memref<8x1xf32, #tpu.memory_space<vmem>>, vector<8x1xf32>,
    %c0_14 = arith.constant 0 : index
    %c0_15 = arith.constant 0 : index
    %23 = vector.load %arg9[%c0_14, %c0_15] : memref<8x8xf32, #tpu.memory_space<vmem>>, vector<8x8xf32>
    %24 = vector.broadcast %13 : vector<8x1xf32> to vector<8x8xf32>
    %25 = arith.mulf %24, %23 : vector<8x8xf32>
    %26 = arith.truncf %16 : vector<8x8xf32> to vector<8x8xbf16>
    %c0_16 = arith.constant 0 : index
    %c0_17 = arith.constant 0 : index
    %c0_18 = arith.constant 0 : index
    %27 = vector.load %arg5[%c0_16, %c0_17, %c0_18] : memref<1x8x8xbf16, #tpu.memory_space<vmem>>, vector<1x8x8xbf16>
    %28 = vector.shape_cast %27 : vector<1x8x8xbf16> to vector<8x8xbf16>
    %cst_19 = arith.constant dense<0.000000e+00> : vector<8x8xf32>
    %29 = tpu.matmul %26, %28, %cst_19 {dimension_numbers = #tpu.dot_dimension_numbers<[1], [0], [0], [1], [0, 0, 1, 1], [], []>} : vector<8x8xbf16>, vector<8x8xbf16>, vector<8x8xf32> -> vector<8x8xf32>
    %30 = arith.addf %25, %29 : vector<8x8xf32>
    %c0_20 = arith.constant 0 : index
    %c0_21 = arith.constant 0 : index
    %31 = vector.load %arg9[%c0_20, %c0_21] : memref<8x8xf32, #tpu.memory_space<vmem>>, vector<8x8xf32>
    tpu.vector_store %arg9[%c0_20, %c0_21], %30 {strides = array<i32>} : memref<8x8xf32, #tpu.memory_space<vmem>>, vector<8x8xf32>,
    %c0_22 = arith.constant 0 : index
    %c0_23 = arith.constant 0 : index
    %32 = vector.load %arg7[%c0_22, %c0_23] : memref<8x1xf32, #tpu.memory_space<vmem>>, vector<8x1xf32>
    tpu.vector_store %arg7[%c0_22, %c0_23], %11 {strides = array<i32>} : memref<8x1xf32, #tpu.memory_space<vmem>>, vector<8x1xf32>,
    %c0_i32_24 = arith.constant 0 : i32
    %33 = arith.cmpi eq, %arg2, %c0_i32_24 : i32
    %34 = arith.extui %33 : i1 to i32
    %c0_i32_25 = arith.constant 0 : i32
    %35 = arith.cmpi ne, %34, %c0_i32_25 : i32
    scf.if %35 {
      %c0_26 = arith.constant 0 : index
      %c0_27 = arith.constant 0 : index
      %36 = vector.load %arg9[%c0_26, %c0_27] : memref<8x8xf32, #tpu.memory_space<vmem>>, vector<8x8xf32>
      %c0_28 = arith.constant 0 : index
      %c0_29 = arith.constant 0 : index
      %37 = vector.load %arg8[%c0_28, %c0_29] : memref<8x1xf32, #tpu.memory_space<vmem>>, vector<8x1xf32>
      %38 = vector.broadcast %37 : vector<8x1xf32> to vector<8x8xf32>
      %39 = arith.divf %36, %38 : vector<8x8xf32>
      %40 = arith.truncf %39 : vector<8x8xf32> to vector<8x8xbf16>
      %c0_30 = arith.constant 0 : index
      %c0_31 = arith.constant 0 : index
      %c0_32 = arith.constant 0 : index
      %41 = vector.load %arg6[%c0_30, %c0_31, %c0_32] : memref<1x8x8xbf16, #tpu.memory_space<vmem>>, vector<1x8x8xbf16>
      %42 = vector.shape_cast %41 : vector<1x8x8xbf16> to vector<8x8xbf16>
      %43 = vector.shape_cast %40 : vector<8x8xbf16> to vector<1x8x8xbf16>
      tpu.vector_store %arg6[%c0_30, %c0_31, %c0_32], %43 {strides = array<i32>} : memref<1x8x8xbf16, #tpu.memory_space<vmem>>, vector<1x8x8xbf16>,
    } else {
    }
    return
  }
  func.func @transform_0(%arg0: i32, %arg1: i32, %arg2: i32) -> (i32, i32, i32) {
    %c0_i32 = arith.constant 0 : i32
    %c0_i32_0 = arith.constant 0 : i32
    return %arg0, %arg1, %c0_i32 : i32, i32, i32
  }
  func.func @transform_1(%arg0: i32, %arg1: i32, %arg2: i32) -> (i32, i32, i32) {
    %c0_i32 = arith.constant 0 : i32
    %c0_i32_0 = arith.constant 0 : i32
    return %arg0, %arg2, %c0_i32 : i32, i32, i32
  }
  func.func @transform_2(%arg0: i32, %arg1: i32, %arg2: i32) -> (i32, i32, i32) {
    %c0_i32 = arith.constant 0 : i32
    %c0_i32_0 = arith.constant 0 : i32
    return %arg0, %arg2, %c0_i32 : i32, i32, i32
  }
  func.func @transform_3(%arg0: i32, %arg1: i32, %arg2: i32) -> (i32, i32, i32) {
    %c0_i32 = arith.constant 0 : i32
    %c0_i32_0 = arith.constant 0 : i32
    return %arg0, %arg1, %c0_i32 : i32, i32, i32
  }
}

module attributes {stable_mosaic.version = 11 : i64} {
  func.func @_attnout_mlp_kernel(%arg0: i32, %arg1: i32, %arg2: i32, %arg3: memref<1x8x32xf32, #tpu.memory_space<vmem>>, %arg4: memref<1x8x32xbf16, #tpu.memory_space<vmem>>, %arg5: memref<32x32xbf16, #tpu.memory_space<vmem>>, %arg6: memref<1x32xf32, #tpu.memory_space<vmem>>, %arg7: memref<1x32xf32, #tpu.memory_space<vmem>>, %arg8: memref<1x32xf32, #tpu.memory_space<vmem>>, %arg9: memref<32x128xbf16, #tpu.memory_space<vmem>>, %arg10: memref<1x128xf32, #tpu.memory_space<vmem>>, %arg11: memref<128x32xbf16, #tpu.memory_space<vmem>>, %arg12: memref<1x32xf32, #tpu.memory_space<vmem>>, %arg13: memref<1x8x32xf32, #tpu.memory_space<vmem>>, %arg14: memref<8x32xf32, #tpu.memory_space<vmem>>, %arg15: memref<8x32xbf16, #tpu.memory_space<vmem>>, %arg16: memref<8x32xf32, #tpu.memory_space<vmem>>) attributes {dimension_semantics = [#tpu.dimension_semantics<parallel>, #tpu.dimension_semantics<parallel>, #tpu.dimension_semantics<arbitrary>], iteration_bounds = array<i64: 2, 1, 1>, scalar_prefetch = 0 : i64, scratch_operands = 3 : i64, tpu.core_type = #tpu.core_type<tc>, window_params = [{transform_indices = @transform_0, window_bounds = array<i64: 1, 8, 32>}, {transform_indices = @transform_1, window_bounds = array<i64: 1, 8, 32>}, {pipeline_mode = #tpu.pipeline_mode<synchronous>, transform_indices = @transform_2, window_bounds = array<i64: 32, 32>}, {pipeline_mode = #tpu.pipeline_mode<synchronous>, transform_indices = @transform_3, window_bounds = array<i64: 1, 32>}, {pipeline_mode = #tpu.pipeline_mode<synchronous>, transform_indices = @transform_4, window_bounds = array<i64: 1, 32>}, {pipeline_mode = #tpu.pipeline_mode<synchronous>, transform_indices = @transform_5, window_bounds = array<i64: 1, 32>}, {transform_indices = @transform_6, window_bounds = array<i64: 32, 128>}, {transform_indices = @transform_7, window_bounds = array<i64: 1, 128>}, {transform_indices = @transform_8, window_bounds = array<i64: 128, 32>}, {pipeline_mode = #tpu.pipeline_mode<synchronous>, transform_indices = @transform_9, window_bounds = array<i64: 1, 32>}, {transform_indices = @transform_10, window_bounds = array<i64: 1, 8, 32>}]} {
    %c0_i32 = arith.constant 0 : i32
    %0 = arith.cmpi eq, %arg2, %c0_i32 : i32
    %1 = arith.extui %0 : i1 to i32
    %c0_i32_0 = arith.constant 0 : i32
    %2 = arith.cmpi ne, %1, %c0_i32_0 : i32
    scf.if %2 {
      %c0_18 = arith.constant 0 : index
      %c0_19 = arith.constant 0 : index
      %c0_20 = arith.constant 0 : index
      %26 = vector.load %arg4[%c0_18, %c0_19, %c0_20] : memref<1x8x32xbf16, #tpu.memory_space<vmem>>, vector<1x8x32xbf16>
      %27 = vector.shape_cast %26 : vector<1x8x32xbf16> to vector<8x32xbf16>
      %c0_21 = arith.constant 0 : index
      %c0_22 = arith.constant 0 : index
      %28 = vector.load %arg5[%c0_21, %c0_22] : memref<32x32xbf16, #tpu.memory_space<vmem>>, vector<32x32xbf16>
      %cst_23 = arith.constant dense<0.000000e+00> : vector<8x32xf32>
      %29 = tpu.matmul %27, %28, %cst_23 {dimension_numbers = #tpu.dot_dimension_numbers<[1], [0], [0], [1], [0, 0, 1, 1], [], []>} : vector<8x32xbf16>, vector<32x32xbf16>, vector<8x32xf32> -> vector<8x32xf32>
      %c0_24 = arith.constant 0 : index
      %c0_25 = arith.constant 0 : index
      %30 = vector.load %arg6[%c0_24, %c0_25] : memref<1x32xf32, #tpu.memory_space<vmem>>, vector<1x32xf32>
      %31 = vector.broadcast %30 : vector<1x32xf32> to vector<8x32xf32>
      %32 = arith.addf %29, %31 : vector<8x32xf32>
      %c0_26 = arith.constant 0 : index
      %c0_27 = arith.constant 0 : index
      %c0_28 = arith.constant 0 : index
      %33 = vector.load %arg3[%c0_26, %c0_27, %c0_28] : memref<1x8x32xf32, #tpu.memory_space<vmem>>, vector<1x8x32xf32>
      %34 = vector.shape_cast %33 : vector<1x8x32xf32> to vector<8x32xf32>
      %35 = arith.addf %34, %32 : vector<8x32xf32>
      %c0_29 = arith.constant 0 : index
      %c0_30 = arith.constant 0 : index
      %36 = vector.load %arg14[%c0_29, %c0_30] : memref<8x32xf32, #tpu.memory_space<vmem>>, vector<8x32xf32>
      tpu.vector_store %arg14[%c0_29, %c0_30], %35 {strides = array<i32>} : memref<8x32xf32, #tpu.memory_space<vmem>>, vector<8x32xf32>,
      %c0_31 = arith.constant 0 : index
      %c0_32 = arith.constant 0 : index
      %37 = vector.load %arg7[%c0_31, %c0_32] : memref<1x32xf32, #tpu.memory_space<vmem>>, vector<1x32xf32>
      %c0_33 = arith.constant 0 : index
      %c0_34 = arith.constant 0 : index
      %38 = vector.load %arg8[%c0_33, %c0_34] : memref<1x32xf32, #tpu.memory_space<vmem>>, vector<1x32xf32>
      %cst_35 = arith.constant dense<0.000000e+00> : vector<8xf32>
      %39 = vector.multi_reduction <add>, %35, %cst_35 [1] : vector<8x32xf32> to vector<8xf32>
      %40 = vector.shape_cast %39 : vector<8xf32> to vector<8x1xf32>
      %cst_36 = arith.constant 3.200000e+01 : f32
      %41 = vector.broadcast %cst_36 : f32 to vector<8x1xf32>
      %42 = arith.divf %40, %41 : vector<8x1xf32>
      %43 = vector.broadcast %42 : vector<8x1xf32> to vector<8x32xf32>
      %44 = arith.subf %35, %43 : vector<8x32xf32>
      %45 = arith.mulf %44, %44 : vector<8x32xf32>
      %cst_37 = arith.constant dense<0.000000e+00> : vector<8xf32>
      %46 = vector.multi_reduction <add>, %45, %cst_37 [1] : vector<8x32xf32> to vector<8xf32>
      %47 = vector.shape_cast %46 : vector<8xf32> to vector<8x1xf32>
      %cst_38 = arith.constant 3.200000e+01 : f32
      %48 = vector.broadcast %cst_38 : f32 to vector<8x1xf32>
      %49 = arith.divf %47, %48 : vector<8x1xf32>
      %50 = vector.broadcast %42 : vector<8x1xf32> to vector<8x32xf32>
      %51 = arith.subf %35, %50 : vector<8x32xf32>
      %cst_39 = arith.constant 9.99999974E-6 : f32
      %52 = vector.broadcast %cst_39 : f32 to vector<8x1xf32>
      %53 = arith.addf %49, %52 : vector<8x1xf32>
      %54 = math.rsqrt %53 : vector<8x1xf32>
      %55 = vector.broadcast %54 : vector<8x1xf32> to vector<8x32xf32>
      %56 = arith.mulf %51, %55 : vector<8x32xf32>
      %57 = vector.broadcast %37 : vector<1x32xf32> to vector<8x32xf32>
      %58 = arith.mulf %56, %57 : vector<8x32xf32>
      %59 = vector.broadcast %38 : vector<1x32xf32> to vector<8x32xf32>
      %60 = arith.addf %58, %59 : vector<8x32xf32>
      %61 = arith.truncf %60 : vector<8x32xf32> to vector<8x32xbf16>
      %c0_40 = arith.constant 0 : index
      %c0_41 = arith.constant 0 : index
      %62 = vector.load %arg15[%c0_40, %c0_41] : memref<8x32xbf16, #tpu.memory_space<vmem>>, vector<8x32xbf16>
      tpu.vector_store %arg15[%c0_40, %c0_41], %61 {strides = array<i32>} : memref<8x32xbf16, #tpu.memory_space<vmem>>, vector<8x32xbf16>,
      %cst_42 = arith.constant 0.000000e+00 : f32
      %63 = vector.broadcast %cst_42 : f32 to vector<8x32xf32>
      %c0_43 = arith.constant 0 : index
      %c0_44 = arith.constant 0 : index
      %64 = vector.load %arg16[%c0_43, %c0_44] : memref<8x32xf32, #tpu.memory_space<vmem>>, vector<8x32xf32>
      tpu.vector_store %arg16[%c0_43, %c0_44], %63 {strides = array<i32>} : memref<8x32xf32, #tpu.memory_space<vmem>>, vector<8x32xf32>,
    } else {
    }
    %c0 = arith.constant 0 : index
    %c0_1 = arith.constant 0 : index
    %3 = vector.load %arg15[%c0, %c0_1] : memref<8x32xbf16, #tpu.memory_space<vmem>>, vector<8x32xbf16>
    %c0_2 = arith.constant 0 : index
    %c0_3 = arith.constant 0 : index
    %4 = vector.load %arg9[%c0_2, %c0_3] : memref<32x128xbf16, #tpu.memory_space<vmem>>, vector<32x128xbf16>
    %cst = arith.constant dense<0.000000e+00> : vector<8x128xf32>
    %5 = tpu.matmul %3, %4, %cst {dimension_numbers = #tpu.dot_dimension_numbers<[1], [0], [0], [1], [0, 0, 1, 1], [], []>} : vector<8x32xbf16>, vector<32x128xbf16>, vector<8x128xf32> -> vector<8x128xf32>
    %c0_4 = arith.constant 0 : index
    %c0_5 = arith.constant 0 : index
    %6 = vector.load %arg10[%c0_4, %c0_5] : memref<1x128xf32, #tpu.memory_space<vmem>>, vector<1x128xf32>
    %7 = vector.broadcast %6 : vector<1x128xf32> to vector<8x128xf32>
    %8 = arith.addf %5, %7 : vector<8x128xf32>
    %cst_6 = arith.constant 5.000000e-01 : f32
    %9 = vector.broadcast %cst_6 : f32 to vector<8x128xf32>
    %10 = arith.mulf %9, %8 : vector<8x128xf32>
    %cst_7 = arith.constant 0.707106769 : f32
    %11 = vector.broadcast %cst_7 : f32 to vector<8x128xf32>
    %12 = arith.mulf %8, %11 : vector<8x128xf32>
    %13 = math.erf %12 : vector<8x128xf32>
    %cst_8 = arith.constant 1.000000e+00 : f32
    %14 = vector.broadcast %cst_8 : f32 to vector<8x128xf32>
    %15 = arith.addf %14, %13 : vector<8x128xf32>
    %16 = arith.mulf %10, %15 : vector<8x128xf32>
    %c0_9 = arith.constant 0 : index
    %c0_10 = arith.constant 0 : index
    %17 = vector.load %arg16[%c0_9, %c0_10] : memref<8x32xf32, #tpu.memory_space<vmem>>, vector<8x32xf32>
    %18 = arith.truncf %16 : vector<8x128xf32> to vector<8x128xbf16>
    %c0_11 = arith.constant 0 : index
    %c0_12 = arith.constant 0 : index
    %19 = vector.load %arg11[%c0_11, %c0_12] : memref<128x32xbf16, #tpu.memory_space<vmem>>, vector<128x32xbf16>
    %cst_13 = arith.constant dense<0.000000e+00> : vector<8x32xf32>
    %20 = tpu.matmul %18, %19, %cst_13 {dimension_numbers = #tpu.dot_dimension_numbers<[1], [0], [0], [1], [0, 0, 1, 1], [], []>} : vector<8x128xbf16>, vector<128x32xbf16>, vector<8x32xf32> -> vector<8x32xf32>
    %21 = arith.addf %17, %20 : vector<8x32xf32>
    %c0_14 = arith.constant 0 : index
    %c0_15 = arith.constant 0 : index
    %22 = vector.load %arg16[%c0_14, %c0_15] : memref<8x32xf32, #tpu.memory_space<vmem>>, vector<8x32xf32>
    tpu.vector_store %arg16[%c0_14, %c0_15], %21 {strides = array<i32>} : memref<8x32xf32, #tpu.memory_space<vmem>>, vector<8x32xf32>,
    %c0_i32_16 = arith.constant 0 : i32
    %23 = arith.cmpi eq, %arg2, %c0_i32_16 : i32
    %24 = arith.extui %23 : i1 to i32
    %c0_i32_17 = arith.constant 0 : i32
    %25 = arith.cmpi ne, %24, %c0_i32_17 : i32
    scf.if %25 {
      %c0_18 = arith.constant 0 : index
      %c0_19 = arith.constant 0 : index
      %26 = vector.load %arg14[%c0_18, %c0_19] : memref<8x32xf32, #tpu.memory_space<vmem>>, vector<8x32xf32>
      %c0_20 = arith.constant 0 : index
      %c0_21 = arith.constant 0 : index
      %27 = vector.load %arg16[%c0_20, %c0_21] : memref<8x32xf32, #tpu.memory_space<vmem>>, vector<8x32xf32>
      %28 = arith.addf %26, %27 : vector<8x32xf32>
      %c0_22 = arith.constant 0 : index
      %c0_23 = arith.constant 0 : index
      %29 = vector.load %arg12[%c0_22, %c0_23] : memref<1x32xf32, #tpu.memory_space<vmem>>, vector<1x32xf32>
      %30 = vector.broadcast %29 : vector<1x32xf32> to vector<8x32xf32>
      %31 = arith.addf %28, %30 : vector<8x32xf32>
      %c0_24 = arith.constant 0 : index
      %c0_25 = arith.constant 0 : index
      %c0_26 = arith.constant 0 : index
      %32 = vector.load %arg13[%c0_24, %c0_25, %c0_26] : memref<1x8x32xf32, #tpu.memory_space<vmem>>, vector<1x8x32xf32>
      %33 = vector.shape_cast %32 : vector<1x8x32xf32> to vector<8x32xf32>
      %34 = vector.shape_cast %31 : vector<8x32xf32> to vector<1x8x32xf32>
      tpu.vector_store %arg13[%c0_24, %c0_25, %c0_26], %34 {strides = array<i32>} : memref<1x8x32xf32, #tpu.memory_space<vmem>>, vector<1x8x32xf32>,
    } else {
    }
    return
  }
  func.func @transform_0(%arg0: i32, %arg1: i32, %arg2: i32) -> (i32, i32, i32) {
    %c0_i32 = arith.constant 0 : i32
    %c0_i32_0 = arith.constant 0 : i32
    return %arg0, %arg1, %c0_i32 : i32, i32, i32
  }
  func.func @transform_1(%arg0: i32, %arg1: i32, %arg2: i32) -> (i32, i32, i32) {
    %c0_i32 = arith.constant 0 : i32
    %c0_i32_0 = arith.constant 0 : i32
    return %arg0, %arg1, %c0_i32 : i32, i32, i32
  }
  func.func @transform_2(%arg0: i32, %arg1: i32, %arg2: i32) -> (i32, i32) {
    %c0_i32 = arith.constant 0 : i32
    %c0_i32_0 = arith.constant 0 : i32
    %c0_i32_1 = arith.constant 0 : i32
    return %c0_i32, %c0_i32_0 : i32, i32
  }
  func.func @transform_3(%arg0: i32, %arg1: i32, %arg2: i32) -> (i32, i32) {
    %c0_i32 = arith.constant 0 : i32
    %c0_i32_0 = arith.constant 0 : i32
    %c0_i32_1 = arith.constant 0 : i32
    return %c0_i32, %c0_i32_0 : i32, i32
  }
  func.func @transform_4(%arg0: i32, %arg1: i32, %arg2: i32) -> (i32, i32) {
    %c0_i32 = arith.constant 0 : i32
    %c0_i32_0 = arith.constant 0 : i32
    %c0_i32_1 = arith.constant 0 : i32
    return %c0_i32, %c0_i32_0 : i32, i32
  }
  func.func @transform_5(%arg0: i32, %arg1: i32, %arg2: i32) -> (i32, i32) {
    %c0_i32 = arith.constant 0 : i32
    %c0_i32_0 = arith.constant 0 : i32
    %c0_i32_1 = arith.constant 0 : i32
    return %c0_i32, %c0_i32_0 : i32, i32
  }
  func.func @transform_6(%arg0: i32, %arg1: i32, %arg2: i32) -> (i32, i32) {
    %c0_i32 = arith.constant 0 : i32
    %c0_i32_0 = arith.constant 0 : i32
    return %c0_i32, %arg2 : i32, i32
  }
  func.func @transform_7(%arg0: i32, %arg1: i32, %arg2: i32) -> (i32, i32) {
    %c0_i32 = arith.constant 0 : i32
    %c0_i32_0 = arith.constant 0 : i32
    return %c0_i32, %arg2 : i32, i32
  }
  func.func @transform_8(%arg0: i32, %arg1: i32, %arg2: i32) -> (i32, i32) {
    %c0_i32 = arith.constant 0 : i32
    %c0_i32_0 = arith.constant 0 : i32
    return %arg2, %c0_i32 : i32, i32
  }
  func.func @transform_9(%arg0: i32, %arg1: i32, %arg2: i32) -> (i32, i32) {
    %c0_i32 = arith.constant 0 : i32
    %c0_i32_0 = arith.constant 0 : i32
    %c0_i32_1 = arith.constant 0 : i32
    return %c0_i32, %c0_i32_0 : i32, i32
  }
  func.func @transform_10(%arg0: i32, %arg1: i32, %arg2: i32) -> (i32, i32, i32) {
    %c0_i32 = arith.constant 0 : i32
    %c0_i32_0 = arith.constant 0 : i32
    return %arg0, %arg1, %c0_i32 : i32, i32, i32
  }
}

</mosaic_0001>

<bundles_post_ra>
// kernel: transformer_block.3
= control target key start
LH: loop header
LB: loop body
LE: loop exit
PB: predicated region body
PF: predicated region fallthrough
CT: control target
= control target key end

     0   :  { %s540_s18 = smov 0   ;;  %s542_s19 = smov 0   ;;  %s595_s0 = inlined_call_operand.vmem [shape: f32[2,8,32], index: 0, kind: input, shape index: {}]   ;;  %s596_s1 = inlined_call_operand.vmem [shape: f32[1,32], index: 1, kind: input, shape index: {}]   ;;  %s597_s2 = inlined_call_operand.vmem [shape: f32[1,32], index: 2, kind: input, shape index: {}]   ;;  %s598_s3 = inlined_call_operand.vmem [shape: bf16[32,96], index: 3, kind: input, shape index: {}]   ;;  %s599_s4 = inlined_call_operand.vmem [shape: f32[1,96], index: 4, kind: input, shape index: {}]   ;;  %s600_s5 = inlined_call_operand.vmem [shape: bf16[2,8,96], index: 5, kind: output, shape index: {}]  }
   0x1   :  { %s544_s20 = smov 0  }
   0x2 LB: > { %s27_s21 = sadd.s32 1, %s502_s19  ;;  %p432_p0 = scmp.ge.s32.totalorder %s506_s20, 1  ;;  %s506_s20 = sphi %s544_s20, %s15_s20   ;;  %s502_s19 = sphi %s542_s19, %s602_s19   ;;  %s498_s18 = sphi %s540_s18, %s601_s18  }
   0x3   : > { %p29_p1 = scmp.ge.s32.totalorder %s27_s21, 2  ;;  %p205_p2 = scmp.lt.s32.totalorder %s506_s20, 3 }
   0x5   : > { %s604_s21 = smov (%p29_p1, %s27_s21), 0  ;;  %p206_p3 = pnand %p432_p0, %p205_p2 }
   0x6   : > { %p237_p4 = scmp.lt.s32.totalorder (!%p206_p3), %s498_s18, 1 }
   0x7   : > { %209 = sbr.rel (%p206_p3) target bundleno = 525 (0x20d), region = 40 }
   0xc   : > { %s606_s18 = smov (!%p237_p4, %s498_s18), 1  ;;  %vm255_vm0 = vcmask 261120   ;;  %v480_v7 = vld [vmem:[%s598_s3 + $0x8] sm:$0xff]   ;;  %v508_v8 = vmov 0.0   ;;  %vm509_vm1 = vmmov 0   ;;  %v481_v9 = vld [vmem:[%s598_s3] sm:$0xff]  }
   0xd   : > { %s433_s22 = sshll.u32 %s606_s18, 3  ;;  %446 = vmatprep.subr.bf16.mxu0 %v508_v8  ;;  %450 = vmatprep.mubr.msk.bf16.mxu0 %vm509_vm1, %v508_v8  ;;  %v435_v14 = vld [vmem:[%s596_s1] ss:$0 sm:$0xff]  ;;  %s434_s11 = sshll.u32 %s606_s18, 2  ;;  %vm352_vm2 = vcmask 781312  }
   0xe   : > { %s243_s25 = scalar_lea.vmem %s595_s0, %s433_s22  ;;  %447 = vmatpush3.bf16.msra.mxu0 %v480_v7  ;;  %v436_v16 = vld [vmem:[%s597_s2] ss:$0 sm:$0xff]  ;;  %s250_s14 = scalar_lea.vmem %s600_s5, %s434_s11 }
   0xf   : > { %v252_v0 = vld [vmem:[%s243_s25] sm:$0xff]  ;;  %448 = vmatprep.subr.bf16.mxu0 %v508_v8 }
  0x10   : > { %v256_v1 = vsel %vm255_vm0, %v252_v0, 0.0  ;;  %v437_v20 = vld [vmem:[%s599_s4] ss:$0 sm:$0xff] }
  0x11   : > { %257 = vadd.xlane.f32.xlu0 %v256_v1 }
  0x12   : > { %449 = vmatpush3.bf16.msra.mxu0 %v481_v9 }
  0x9a   : > { %v258_v2 = vpop.xlane.xlu0 %257 }
  0x9b   : > { %v260_v3 = vmul.f32 0.03125, %v258_v2 }
  0x9d   : > { %v261_v4 = vsub.f32 %v252_v0, %v260_v3 }
  0x9f   : > { %v262_v5 = vmul.f32 %v261_v4, %v261_v4 }
  0xa1   : > { %v263_v6 = vsel %vm255_vm0, %v262_v5, 0.0 }
  0xa2   : > { %264 = vadd.xlane.f32.xlu0 %v263_v6 }
 0x12b   : > { %v265_v10 = vpop.xlane.xlu0 %264 }
 0x12c   : > { %v266_v11 = vmul.f32 0.03125, %v265_v10 }
 0x12e   : > { %v267_v12 = vadd.f32 1e-05, %v266_v11 }
 0x130   : > { %482 = vrsqrt.f32 %v267_v12 }
 0x13d   : > { %v483_v13 = vpop.eup %482 }
 0x13e   : > { %v269_v15 = vmul.f32 %v483_v13, %v261_v4 }
 0x140   : > { %v276_v17 = vmul.f32 %v435_v14, %v269_v15 }
 0x142   : > { %v283_v18 = vadd.f32 %v436_v16, %v276_v17 }
 0x144   : > { %v284_v19 = vpack.c.bf16 %v283_v18, %v283_v18 }
 0x146   : > { %451 = vmatmul.mubr.msk.bf16.vlgmr.msra.gmra.mxu0 %vm255_vm0, %v284_v19 }
 0x206   : > { %v345_v21 = vpop.f32.mrf.mxu0 }
 0x207   : > { %v346_v22 = vadd.f32 %v437_v20, %v345_v21 }
 0x208   : > { %v452_v23 = vpop.f32.mrf.mxu0 }
 0x209   : > { %v351_v24 = vpack.c.bf16 %v346_v22, %v346_v22 }
 0x20a   : > { %v348_v25 = vpop.f32.mrf.mxu0 }
 0x20b   : > { %353 = vst.msk [vmem:[%s250_s14] sm:$0xf] %vm352_vm2, %v351_v24 }
 0x20c   : > { %v453_v26 = vpop.f32.mrf.mxu0 }
 0x20d PF: > { %s15_s20 = sadd.s32 1, %s506_s20   ;;  %s601_s18 = smov %s502_s19 }
 0x20e   : > { %p12_p5 = scmp.ge.s32.totalorder %s15_s20, 4   ;;  %s602_s19 = smov %s604_s21 }
 0x210   :  { %14 = sbr.rel (!%p12_p5) target bundleno = 2 (0x2), region = 70 }

// kernel: transformer_block.4
= control target key start
LH: loop header
LB: loop body
LE: loop exit
PB: predicated region body
PF: predicated region fallthrough
CT: control target
= control target key end

     0   :  { %s637_s12 = smov 0   ;;  %s639_s13 = smov 0   ;;  %s693_s0 = inlined_call_operand.vmem [shape: bf16[8,8,8], index: 0, kind: input, shape index: {}]   ;;  %s694_s1 = inlined_call_operand.vmem [shape: bf16[8,8,8], index: 1, kind: input, shape index: {}]   ;;  %s695_s2 = inlined_call_operand.vmem [shape: bf16[8,8,8], index: 2, kind: input, shape index: {}]   ;;  %s696_s3 = inlined_call_operand.vmem [shape: bf16[8,8,8], index: 3, kind: output, shape index: {}]  }
   0x1   :  { %s641_s14 = smov 0  }
   0x2 LB: > { %s32_s15 = sadd.s32 1, %s607_s13  ;;  %p528_p0 = scmp.ge.s32.totalorder %s611_s14, 1  ;;  %s611_s14 = sphi %s641_s14, %s13_s14   ;;  %s607_s13 = sphi %s639_s13, %s698_s13   ;;  %s603_s12 = sphi %s637_s12, %s697_s12  }
   0x3   : > { %p34_p1 = scmp.ge.s32.totalorder %s32_s15, 8  ;;  %p190_p2 = scmp.lt.s32.totalorder %s611_s14, 9 }
   0x5   : > { %s700_s15 = smov (%p34_p1, %s32_s15), 0  ;;  %p191_p3 = pnand %p528_p0, %p190_p2 }
   0x6   : > { %p232_p4 = scmp.lt.s32.totalorder (!%p191_p3), %s603_s12, 7 }
   0x7   : > { %194 = sbr.rel (%p191_p3) target bundleno = 794 (0x31a), region = 32 }
   0xc   : > { %vm268_vm0 = vcmask 64512   ;;  %v613_v0 = vmov 0.0   ;;  %vm614_vm1 = vmmov 0   ;;  %s702_s12 = smov (!%p232_p4, %s603_s12), 7  ;;  %vm265_vm2 = vcmask 7168  }
   0xd   : > { %541 = vmatprep.subr.bf16.mxu0 %v613_v0  ;;  %269 = vst.msk [vmem:[#allocation4] sm:$0xff] %vm268_vm0, %v613_v0  ;;  %543 = vmatprep.mubr.msk.bf16.mxu0 %vm614_vm1, %v613_v0  ;;  %s656_s16 = sshll.u32 %s702_s12, 2  ;;  %v615_v4 = vmov -inf   ;;  %v616_v10 = vmov 0   ;;  %vm355_vm3 = vcmask 1043456   ;;  %vm415_vm4 = vcmask 60416  }
   0xe   : > { %547 = vmatprep.subr.bf16.mxu1 %v613_v0  ;;  %549 = vmatprep.mubr.msk.bf16.mxu1 %vm614_vm1, %v613_v0  ;;  %s245_s19 = scalar_lea.vmem %s694_s1, %s656_s16  ;;  %s238_s22 = scalar_lea.vmem %s693_s0, %s656_s16  ;;  %266 = vst.msk [vmem:[#allocation2] sm:$0xff] %vm265_vm2, %v615_v4  ;;  %267 = vst.msk [vmem:[#allocation3] sm:$0xff] %vm265_vm2, %v613_v0 }
   0xf   : > { %v271_v1 = vld [vmem:[%s245_s19] sm:$0xf]  ;;  %581 = vset.pattern.permute.xlu0 %v616_v10  ;;  %582 = vset.pattern.permute.xlu1 %v616_v10  ;;  %s252_s25 = scalar_lea.vmem %s695_s2, %s656_s16  ;;  %s259_s28 = scalar_lea.vmem %s696_s3, %s656_s16 }
  0x10   : > { %v277_v2 = vsel %vm268_vm0, %v271_v1, 0  ;;  %v270_v3 = vld [vmem:[%s238_s22] sm:$0xf] }
  0x11   : > { %542 = vmatpush3.bf16.xpose.msra.mxu0 %v277_v2  ;;  %v351_v15 = vld [vmem:[%s252_s25] sm:$0xf] }
  0x12   : > { %v357_v16 = vsel %vm355_vm3, %v351_v15, 0 }
  0x13   : > { %548 = vmatpush3.bf16.msra.mxu1 %v357_v16 }
  0x14   : > { %v343_v35 = vld [vmem:[#allocation4] sm:$0xff] }
  0x15   : > { %v319_v11 = vld [vmem:[#allocation2] sm:$0xff]  ;;  %v335_v25 = vld [vmem:[#allocation3] sm:$0xff] }
  0x18   : > { %544 = vmatmul.mubr.msk.bf16.vlgmr.msra.gmra.mxu0 %vm268_vm0, %v270_v3 }
  0xd8   : > { %v313_v5 = vpop.f32.mrf.mxu0 }
  0xd9   : > { %v320_v6 = vsel %vm268_vm0, %v313_v5, -inf }
  0xda   : > { %321 = vmax.xlane.f32.xlu0 %v320_v6  ;;  %v545_v7 = vpop.f32.mrf.mxu0 }
  0xdc   : > { %v316_v8 = vpop.f32.mrf.mxu0 }
  0xde   : > { %v546_v9 = vpop.f32.mrf.mxu0 }
 0x163   : > { %v322_v12 = vpop.xlane.xlu0 %321 }
 0x164   : > { %v323_v13 = vmax.f32 %v319_v11, %v322_v12 }
 0x166   : > { %v324_v14 = vsub.f32 %v319_v11, %v323_v13  ;;  %401 = vst.msk [vmem:[#allocation2] sm:$0xff] %vm265_vm2, %v323_v13  ;;  %329 = vperm.xlu0 %581, %v323_v13  }
 0x168   : > { %v325_v23 = vmul.f32 1.442695, %v324_v14 }
 0x1e1   : > { %v330_v17 = vpop.permute.xlu0 %329 }
 0x1e2   : > { %v332_v18 = vsub.f32 %v313_v5, %v330_v17 }
 0x1e4   : > { %v333_v19 = vmul.f32 1.442695, %v332_v18 }
 0x1e6   : > { %583 = vpow2.f32 %v333_v19 }
 0x1e7   : > { %585 = vpow2.f32 %v325_v23 }
 0x1f3   : > { %v584_v20 = vpop.eup %583 }
 0x1f4   : > { %v337_v21 = vsel %vm268_vm0, %v584_v20, 0.0  ;;  %v350_v22 = vpack.c.bf16 %v584_v20, %v584_v20  ;;  %v586_v24 = vpop.eup %585 }
 0x1f5   : > { %338 = vadd.xlane.f32.xlu1 %v337_v21  ;;  %v336_v26 = vmul.f32 %v586_v24, %v335_v25 }
 0x1f6   : > { %550 = vmatmul.mubr.msk.bf16.vlgmr.msra.gmra.mxu1 %vm268_vm0, %v350_v22 }
 0x27e   : > { %v339_v27 = vpop.xlane.xlu1 %338 }
 0x27f   : > { %v340_v28 = vadd.f32 %v339_v27, %v336_v26 }
 0x281   : > { %342 = vst.msk [vmem:[#allocation3] sm:$0xff] %vm265_vm2, %v340_v28 }
 0x288   : > { %v406_v29 = vld [vmem:[#allocation3] sm:$0xff] }
 0x289   : > { %409 = vperm.xlu1 %582, %v406_v29  }
 0x28d   : > { %346 = vperm.xlu1 %582, %v586_v24  }
 0x2b6   : > { %v393_v30 = vpop.f32.mrf.mxu1 }
 0x2b8   : > { %v551_v31 = vpop.f32.mrf.mxu1 }
 0x2ba   : > { %v396_v32 = vpop.f32.mrf.mxu1 }
 0x2bc   : > { %v552_v33 = vpop.f32.mrf.mxu1 }
 0x304   : > { %v410_v34 = vpop.permute.xlu1 %409 }
 0x305   : > { %587 = vrcp.f32 %v410_v34 }
 0x308   : > { %v347_v36 = vpop.permute.xlu1 %346 }
 0x309   : > { %v349_v37 = vmul.f32 %v347_v36, %v343_v35 }
 0x30b   : > { %v399_v38 = vadd.f32 %v393_v30, %v349_v37 }
 0x30d   : > { %400 = vst.msk [vmem:[#allocation4] sm:$0xff] %vm268_vm0, %v399_v38 }
 0x312   : > { %v588_v39 = vpop.eup %587 }
 0x314   : > { %v405_v40 = vld [vmem:[#allocation4] sm:$0xff] }
 0x315   : > { %v413_v41 = vmul.f32 %v588_v39, %v405_v40 }
 0x317   : > { %v414_v42 = vpack.c.bf16 %v413_v41, %v413_v41 }
 0x319   : > { %416 = vst.msk [vmem:[%s259_s28] sm:$0xf] %vm415_vm4, %v414_v42 }
 0x31a PF: > { %s13_s14 = sadd.s32 1, %s611_s14   ;;  %s697_s12 = smov %s607_s13 }
 0x31b   : > { %p10_p5 = scmp.ge.s32.totalorder %s13_s14, 10   ;;  %s698_s13 = smov %s700_s15 }
 0x31d   :  { %12 = sbr.rel (!%p10_p5) target bundleno = 2 (0x2), region = 76 }

// kernel: transformer_block.5
= control target key start
LH: loop header
LB: loop body
LE: loop exit
PB: predicated region body
PF: predicated region fallthrough
CT: control target
= control target key end

     0   :  { %s1391_s0 = inlined_call_operand.vmem [shape: f32[2,8,32], index: 0, kind: input, shape index: {}]   ;;  %s1392_s1 = inlined_call_operand.vmem [shape: bf16[2,8,32], index: 1, kind: input, shape index: {}]   ;;  %s1393_s2 = inlined_call_operand.vmem [shape: bf16[32,32], index: 2, kind: input, shape index: {}]   ;;  %s1394_s3 = inlined_call_operand.vmem [shape: f32[1,32], index: 3, kind: input, shape index: {}]   ;;  %s1395_s4 = inlined_call_operand.vmem [shape: f32[1,32], index: 4, kind: input, shape index: {}]   ;;  %s1396_s5 = inlined_call_operand.vmem [shape: f32[1,32], index: 5, kind: input, shape index: {}]   ;;  %s1397_s6 = inlined_call_operand.vmem [shape: bf16[32,128], index: 6, kind: input, shape index: {}]   ;;  %s1398_s7 = inlined_call_operand.vmem [shape: f32[1,128], index: 7, kind: input, shape index: {}]   ;;  %s1399_s8 = inlined_call_operand.vmem [shape: bf16[128,32], index: 8, kind: input, shape index: {}]   ;;  %s1400_s9 = inlined_call_operand.vmem [shape: f32[1,32], index: 9, kind: input, shape index: {}]   ;;  %s1401_s10 = inlined_call_operand.hbm [shape: f32[2,8,32], index: 10, kind: output, shape index: {}]  }
   0x1   :  { %1402 = sst [smem:[#allocation8_spill]] %s1391_s0 }
   0x2   :  { %1403 = sst [smem:[#allocation9_spill]] %s1393_s2 }
   0x3   :  { %15 = vsyncpa [#allocation6], 0 }
   0x4   :  { %17 = vsyncpa [#allocation6 + $0x1], 0  ;;  %s1214_s13 = smov 0   ;;  %s1216_s14 = smov 0  }
   0x5   :  { %s1218_s15 = smov 0   ;;  %s1220_s16 = smov 0  }
   0x6   :  { %s1222_s17 = smov 0   ;;  %s1224_s18 = smov 0  }
   0x7 LB: > { %s920_s19 = sadd.s32 4294967295, %s1154_s18   ;;  %s921_s20 = sadd.s32 4294967294, %s1154_s18   ;;  %s1154_s18 = sphi %s1224_s18, %s23_s18   ;;  %s1150_s17 = sphi %s1222_s17, %s1412_s17   ;;  %s1146_s16 = sphi %s1220_s16, %s1411_s16   ;;  %s1142_s15 = sphi %s1218_s15, %s1410_s15   ;;  %s1138_s14 = sphi %s1216_s14, %s1409_s14   ;;  %s1134_s13 = sphi %s1214_s13, %s1408_s13  }
   0x8   : > { %s42_s21 = sadd.s32 1, %s1150_s17  ;;  %s290_s22 = sadd.s32 1, %s1142_s15 }
   0x9   : > { %p44_p0 = scmp.ge.s32.totalorder %s42_s21, 2  ;;  %p300_p1 = scmp.ne.s32.totalorder %s1142_s15, %s1138_s14 }
   0xa   : > { %p301_p2 = scmp.eq.s32.totalorder %s920_s19, 1  ;;  %p306_p3 = scmp.ne.s32.totalorder %s1138_s14, %s1134_s13 }
   0xb   : > { %s1414_s21 = smov (%p44_p0, %s42_s21), 0  ;;  %p307_p5 = scmp.eq.s32.totalorder %s921_s20, 1 }
   0xc   : > { %p1254_p4 = por %p301_p2, %p300_p1  ;;  %s285_s24 = ssub.s32 %s1150_s17, %s1414_s21 }
   0xd   : > { %p927_p6 = scmp.ge.s32.totalorder %s1154_s18, 1  ;;  %p288_p7 = scmp.eq.s32.totalorder %s285_s24, 0 }
   0xe   : > { %p1261_p8 = por %p307_p5, %p306_p3  ;;  %p382_p9 = scmp.lt.s32.totalorder %s1154_s18, 3 }
   0xf   : > { %s1267_s26 = scalar_select %p288_p7, %s1142_s15, %s290_s22  }
  0x10   : > { %p383_p10 = pnand %p927_p6, %p382_p9 }
  0x11   : > { %s1406_s2 = sld [smem:[#allocation9_spill]] (!%p383_p10)  ;;  %p441_p11 = scmp.lt.s32.totalorder (!%p383_p10), %s1146_s16, 1 }
  0x12   : > { %386 = sbr.rel (%p383_p10) target bundleno = 984 (0x3d8), region = 60  ;;  %s1407_s0 = sld [smem:[#allocation8_spill]] (!%p383_p10) }
  0x13   : > { %s438_s20 = sand.u32 (!%p383_p10), 1, %s1138_s14   ;;  %s951_s28 = sshll.u32 (!%p383_p10), %s1146_s16, 7 }
  0x14   : > { %s775_s19 = scalar_lea.sflag (!%p383_p10), [#allocation6], %s438_s20 }
  0x17   : > { %v1062_v0 = vld [vmem:[%s1406_s2 + $0x8] sm:$0xff]   ;;  %v1156_v1 = vmov 0.0   ;;  %v1063_v2 = vld [vmem:[%s1406_s2] sm:$0xff]   ;;  %vm1157_vm0 = vmmov 0   ;;  %vm497_vm1 = vcmask 261120   ;;  %s442_s11 = scalar_select %p441_p11, %s1146_s16, 1 }
  0x18   : > { %969 = vmatprep.subr.bf16.mxu1 %v1156_v1  ;;  %985 = vmatprep.subr.bf16.mxu0 %v1156_v1  ;;  %577 = vst.msk [vmem:[#allocation4] sm:$0xff] %vm497_vm1, %v1156_v1  ;;  %v931_v4 = vld [vmem:[%s1394_s3] ss:$0 sm:$0xff]  ;;  %v1064_v18 = vld [vmem:[%s1397_s6 + $0x8] sm:$0xff]   ;;  %v1066_v20 = vld [vmem:[%s1399_s8 + $0x38] sm:$0xff]   ;;  %vm575_vm2 = vcmask 257024  }
  0x19   : > { %970 = vmatpush3.bf16.msra.mxu1 %v1062_v0  ;;  %973 = vmatprep.mubr.msk.bf16.mxu1 %vm1157_vm0, %v1156_v1  ;;  %s930_s12 = sshll.u32 %s442_s11, 2  ;;  %s929_s24 = sshll.u32 %s442_s11, 3  ;;  %v1065_v19 = vld [vmem:[%s1397_s6] sm:$0xff]   ;;  %v1067_v21 = vld [vmem:[%s1399_s8 + $0x30] sm:$0xff]   ;;  %v1068_v33 = vld [vmem:[%s1399_s8 + $0x28] sm:$0xff]  }
  0x1a   : > { %971 = vmatprep.subr.bf16.mxu1 %v1156_v1  ;;  %1001 = vmatprep.mubr.msk.bf16.mxu0 %vm1157_vm0, %v1156_v1  ;;  %s454_s22 = scalar_lea.vmem %s1392_s1, %s930_s12  ;;  %s447_s29 = scalar_lea.vmem %s1407_s0, %s929_s24  ;;  %v935_v26 = vld [vmem:[%s1395_s4] ss:$0 sm:$0xff]  ;;  %v1070_v35 = vld [vmem:[%s1399_s8 + $0x18] sm:$0xff]   ;;  %v1071_v36 = vld [vmem:[%s1399_s8 + $0x10] sm:$0xff]  }
  0x1b   : > { %v473_v3 = vld [vmem:[%s454_s22] sm:$0xf]  ;;  %986 = vmatpush3.bf16.msra.mxu0 %v1066_v20  ;;  %v1072_v37 = vld [vmem:[%s1399_s8 + $0x8] sm:$0xff]   ;;  %s928_s22 = sshll.u32 %s438_s20, 3  ;;  %s787_s12 = scalar_lea.hbm %s1401_s10, %s951_s28 }
  0x1c   : > { %v541_v6 = vld [vmem:[%s447_s29] sm:$0xff]  ;;  %987 = vmatprep.subr.bf16.mxu0 %v1156_v1  ;;  %s440_s29 = scalar_lea.vmem [#allocation5], %s928_s22  ;;  %s1158_s24 = smov [#allocation5]  }
  0x1d   : > { %972 = vmatpush3.bf16.msra.mxu1 %v1063_v2  ;;  %v936_v28 = vld [vmem:[%s1396_s5] ss:$0 sm:$0xff]  ;;  %s789_s30 = sshll.u32 %s440_s29, 4  ;;  %s1082_s27 = sshll.u32 %s1158_s24, 4  ;;  %s790_s30 = int_to_ptr.vmem [resolvable:$true] %s789_s30  ;;  %s1083_s27 = int_to_ptr.vmem [resolvable:$false] %s1082_s27 }
  0x1e   : > { %977 = vmatprep.subr.bf16.mxu1 %v1156_v1  ;;  %v1069_v34 = vld [vmem:[%s1399_s8 + $0x20] sm:$0xff]   ;;  %s1078_s0 = scalar_lea.vmem %s790_s30, 128  ;;  %s1084_s16 = scalar_lea.vmem %s1083_s27, 256 }
  0x1f   : > { %988 = vmatpush3.bf16.msra.mxu0 %v1067_v21  ;;  %v1073_v38 = vld [vmem:[%s1399_s8] sm:$0xff]   ;;  %v651_v51 = vld [vmem:[#allocation4] sm:$0xff]  ;;  %p1079_p12 = scmp.ne.s32.totalorder %s790_s30, %s1078_s0  ;;  %p1085_p1 = scmp.lt.s32.totalorder %s790_s30, %s1083_s27 }
  0x20   : > { %974 = vmatmul.mubr.msk.bf16.vlgmr.msra.gmra.mxu1 %vm497_vm1, %v473_v3  ;;  %989 = vmatprep.subr.bf16.mxu0 %v1156_v1  ;;  %v937_v39 = vld [vmem:[%s1398_s7] ss:$0 sm:$0xff]  ;;  %p1086_p2 = scmp.lt.s32.totalorder %s1084_s16, %s1078_s0 }
  0x21   : > { %981 = vmatprep.mubr.msk.bf16.mxu1 %vm1157_vm0, %v1156_v1  ;;  %978 = vmatpush3.bf16.msra.mxu1 %v1064_v18  ;;  %v949_v59 = vld [vmem:[%s1400_s9] ss:$0 sm:$0xff]  ;;  %p1080_p13 = pnand %p1079_p12, %p1254_p4 }
  0x22   : > { %979 = vmatprep.subr.bf16.mxu1 %v1156_v1  ;;  %p1087_p3 = por %p1086_p2, %p1085_p1 }
  0x23   : > { %990 = vmatpush3.bf16.msra.mxu0 %v1068_v33  ;;  %p1081_p0 = pneg %p1080_p13 }
  0x24   : > { %991 = vmatprep.subr.bf16.mxu0 %v1156_v1 }
  0x25   : > { %980 = vmatpush3.bf16.msra.mxu1 %v1065_v19  ;;  %p1088_p5 = pnand %p1087_p3, %p1081_p0 }
  0x27   : > { %992 = vmatpush3.bf16.msra.mxu0 %v1069_v34 }
  0x28   : > { %993 = vmatprep.subr.bf16.mxu0 %v1156_v1 }
  0x2b   : > { %994 = vmatpush3.bf16.msra.mxu0 %v1070_v35 }
  0x2c   : > { %995 = vmatprep.subr.bf16.mxu0 %v1156_v1 }
  0x2f   : > { %996 = vmatpush3.bf16.msra.mxu0 %v1071_v36 }
  0x30   : > { %997 = vmatprep.subr.bf16.mxu0 %v1156_v1 }
  0x33   : > { %998 = vmatpush3.bf16.msra.mxu0 %v1072_v37 }
  0x34   : > { %999 = vmatprep.subr.bf16.mxu0 %v1156_v1 }
  0x37   : > { %1000 = vmatpush3.bf16.msra.mxu0 %v1073_v38 }
  0xe0   : > { %v535_v5 = vpop.f32.mrf.mxu1 }
  0xe1   : > { %v536_v7 = vadd.f32 %v931_v4, %v535_v5 }
  0xe2   : > { %v975_v8 = vpop.f32.mrf.mxu1 }
  0xe3   : > { %v542_v9 = vadd.f32 %v541_v6, %v536_v7 }
  0xe4   : > { %v538_v10 = vpop.f32.mrf.mxu1 }
  0xe5   : > { %543 = vst.msk [vmem:[#allocation2] sm:$0xff] %vm497_vm1, %v542_v9  ;;  %v546_v11 = vsel %vm497_vm1, %v542_v9, 0.0 }
  0xe6   : > { %v976_v12 = vpop.f32.mrf.mxu1  ;;  %547 = vadd.xlane.f32.xlu0 %v546_v11 }
  0xec   : > { %v762_v57 = vld [vmem:[#allocation2] sm:$0xff] }
 0x16f   : > { %v548_v13 = vpop.xlane.xlu0 %547 }
 0x170   : > { %v550_v14 = vmul.f32 0.03125, %v548_v13 }
 0x172   : > { %v551_v15 = vsub.f32 %v542_v9, %v550_v14 }
 0x174   : > { %v552_v16 = vmul.f32 %v551_v15, %v551_v15 }
 0x176   : > { %v553_v17 = vsel %vm497_vm1, %v552_v16, 0.0 }
 0x177   : > { %554 = vadd.xlane.f32.xlu0 %v553_v17 }
 0x200   : > { %v555_v22 = vpop.xlane.xlu0 %554 }
 0x201   : > { %v556_v23 = vmul.f32 0.03125, %v555_v22 }
 0x203   : > { %v557_v24 = vadd.f32 1e-05, %v556_v23 }
 0x205   : > { %1074 = vrsqrt.f32 %v557_v24 }
 0x212   : > { %v1075_v25 = vpop.eup %1074 }
 0x213   : > { %v559_v27 = vmul.f32 %v1075_v25, %v551_v15 }
 0x215   : > { %v566_v29 = vmul.f32 %v935_v26, %v559_v27 }
 0x217   : > { %v573_v30 = vadd.f32 %v936_v28, %v566_v29 }
 0x219   : > { %v574_v31 = vpack.c.bf16 %v573_v30, %v573_v30 }
 0x21b   : > { %576 = vst.msk [vmem:[#allocation3] sm:$0xf] %vm575_vm2, %v574_v31 }
 0x222   : > { %v578_v32 = vld [vmem:[#allocation3] sm:$0xf] }
 0x223   : > { %982 = vmatmul.mubr.msk.bf16.vlgmr.msra.gmra.mxu1 %vm497_vm1, %v578_v32 }
 0x2e3   : > { %v640_v40 = vpop.f32.mrf.mxu1 }
 0x2e4   : > { %v641_v41 = vadd.f32 %v937_v39, %v640_v40 }
 0x2e5   : > { %v983_v42 = vpop.f32.mrf.mxu1 }
 0x2e6   : > { %v647_v43 = vmul.f32 0.70710677, %v641_v41  ;;  %v646_v47 = vmul.f32 0.5, %v641_v41 }
 0x2e7   : > { %v643_v44 = vpop.f32.mrf.mxu1 }
 0x2e8   : > { %1076 = verf.f32 %v647_v43 }
 0x2e9   : > { %v984_v45 = vpop.f32.mrf.mxu1 }
 0x2f5   : > { %v1077_v46 = vpop.eup %1076 }
 0x2f6   : > { %v649_v48 = vadd.f32 1.0, %v1077_v46 }
 0x2f8   : > { %v650_v49 = vmul.f32 %v649_v48, %v646_v47 }
 0x2fa   : > { %v652_v50 = vpack.c.bf16 %v650_v49, %v650_v49 }
 0x2fc   : > { %1002 = vmatmul.mubr.bf16.vlgmr.msra.gmra.mxu0 %v652_v50 }
 0x3bc   : > { %v751_v52 = vpop.f32.mrf.mxu0 }
 0x3bd   : > { %v757_v53 = vadd.f32 %v751_v52, %v651_v51 }
 0x3be   : > { %v1003_v54 = vpop.f32.mrf.mxu0 }
 0x3bf   : > { %758 = vst.msk [vmem:[#allocation4] sm:$0xff] %vm497_vm1, %v757_v53 }
 0x3c0   : > { %v754_v55 = vpop.f32.mrf.mxu0 }
 0x3c2   : > { %v1004_v56 = vpop.f32.mrf.mxu0 }
 0x3c6   : > { %v763_v58 = vld [vmem:[#allocation4] sm:$0xff] }
 0x3c7   : > { %v764_v60 = vadd.f32 %v763_v58, %v762_v57 }
 0x3c9   : > { %v772_v61 = vadd.f32 %v949_v59, %v764_v60 }
 0x3cb   : > { %773 = vst.msk [vmem:[%s440_s29] sm:$0xff] %vm497_vm1, %v772_v61 }
 0x3cc   : > { %1091 = shalt.err (!%p1088_p5)
}
 0x3cd   : > { %s1092_s22 = scalar_lea.hbm %s787_s12, 128  ;;  %s1096_s29 = scalar_lea.hbm %s1401_s10, 256 }
 0x3ce   : > { %p1093_p6 = scmp.ne.s32.totalorder %s787_s12, %s1092_s22  ;;  %p1097_p10 = scmp.lt.s32.totalorder %s787_s12, %s1401_s10 }
 0x3cf   : > { %p1098_p11 = scmp.lt.s32.totalorder %s1096_s29, %s1092_s22 }
 0x3d0   : > { %p1094_p7 = pnand %p1093_p6, %p1254_p4 }
 0x3d1   : > { %p1099_p12 = por %p1098_p11, %p1097_p10 }
 0x3d2   : > { %p1095_p9 = pneg %p1094_p7 }
 0x3d4   : > { %p1100_p13 = pnand %p1099_p12, %p1095_p9 }
 0x3d6   : > { %1103 = shalt.err (!%p1100_p13)
}
 0x3d7   : > { %1005 = dma.vmem_to_hbm [thread:$0]  (%p1254_p4), %s790_s30, 128, %s787_s12, %s775_s19  }
 0x3d8 PF: > { %p1011_p0 = scmp.ge.s32.totalorder %s1154_s18, 2  ;;  %s801_s0 = sand.u32 1, %s1134_s13  }
 0x3d9   : > { %s802_s24 = scalar_lea.sflag [#allocation6], %s801_s0 }
 0x3da   : > { %p1008_p1 = pnand %p1011_p0, %p1261_p8 }
 0x3dc   : > { %p1009_p2 = pneg %p1008_p1 }
 0x3de   : > { %1129 = dma.done.wait (%p1009_p2), %s802_s24, 128  }
 0x3df   : > { %1131 = vsyncadd (%p1009_p2), %s802_s24, 4294967168  ;;  %s23_s18 = sadd.s32 1, %s1154_s18   ;;  %s1408_s13 = smov %s1138_s14 }
 0x3e0   : > { %p20_p3 = scmp.ge.s32.totalorder %s23_s18, 4   ;;  %s1409_s14 = smov %s1142_s15 }
 0x3e1   : > { %s1410_s15 = smov %s1267_s26  ;;  %s1411_s16 = smov %s1150_s17 }
 0x3e2   : > { %s1412_s17 = smov %s1414_s21  ;;  %22 = sbr.rel (!%p20_p3) target bundleno = 7 (0x7), region = 115 }
 0x3e7   :  { %807 = vsyncpa [#allocation6], 1 }
 0x3e8   :  { %809 = vsyncpa [#allocation6 + $0x1], 1 }

</bundles_post_ra>
